<compile_context>
chip_gen: v5e
topology: v5e:2x2
jax: 0.10.0
libtpu: 0.0.40
codegen_flags: <defaults>
</compile_context>

<pallas_src>
import functools

import jax
import jax.numpy as jnp
from jax.experimental import pallas as pl
from jax.experimental.pallas import tpu as pltpu


# ----------------------------- shared math helpers (f32) -----------------------------

def _elu(x):
    # ELU(x) = x for x > 0, exp(x) - 1 otherwise
    return jnp.where(x > 0, x, jnp.exp(jnp.minimum(x, 0.0)) - 1.0)


def _softplus(x):
    # numerically stable softplus
    return jnp.maximum(x, 0.0) + jnp.log1p(jnp.exp(-jnp.abs(x)))


# ----------------------------------- kernel ---------------------------------------

def representation_kernel(emb_ref, det_ref, eps_ref, *refs,
                          num_layers, stoch, min_std, mxu_dtype):
    """refs = (W0_emb, W0_det, W1, ..., W_{L-2}, W_mean, W_std, bias_pack, out_ref).

    bias_pack rows: [b0, b1, ..., b_{L-2}, b_mean, b_std], zero-padded to max width.
    Output slab layout along lanes: [mean | std | posterior], each `stoch` wide.
    """
    *w_refs, b_ref, out_ref = refs

    def mm(a, w_ref):
        # bf16 (or f32) operands at the MXU boundary, f32 accumulation.
        return jnp.dot(a.astype(mxu_dtype), w_ref[...].astype(mxu_dtype),
                       preferred_element_type=jnp.float32)

    # ---- layer 0: the (embedded ++ deterministic) concat is fused into two matmuls ----
    w0_out = w_refs[0].shape[1]
    h = mm(emb_ref[...], w_refs[0]) + mm(det_ref[...], w_refs[1])
    h = h + b_ref[0:1, :w0_out]
    h = _elu(h)

    # ---- hidden layers 1 .. L-2 ----
    widx = 2
    for l in range(1, num_layers - 1):
        wl_out = w_refs[widx].shape[1]
        h = mm(h, w_refs[widx]) + b_ref[l:l + 1, :wl_out]
        h = _elu(h)
        widx += 1

    # ---- last layer, split into mean / std heads (lane offset 0 for both) ----
    mean = mm(h, w_refs[widx]) + b_ref[num_layers - 1:num_layers, :stoch]
    std_raw = mm(h, w_refs[widx + 1]) + b_ref[num_layers:num_layers + 1, :stoch]
    std = _softplus(std_raw) + min_std
    posterior = mean + std * eps_ref[...]          # reparameterized sample (rsample)

    # single lane-packed store (one output DMA stream instead of three narrow ones)
    out_ref[...] = jnp.concatenate([mean, std, posterior], axis=-1)


# ---------------------------------- wrapper ----------------------------------------

def _round_up(a, m):
    return (a + m - 1) // m * m


def representation_forward(embedded, deterministic, eps, weights, biases, *,
                           stoch, min_std=0.1, block_m=256,
                           mxu_dtype=jnp.bfloat16,
                           vmem_limit_bytes=32 * 1024 * 1024):
    """RepresentationModel forward pass as a single batch-tiled Pallas call.

    Returns (mean, std, posterior); (mean, std) parameterize the Normal posterior_dist.
    """
    num_layers = len(weights)
    assert num_layers >= 2, "kernel assumes an MLP with >= 2 Linear layers"
    assert block_m % 8 == 0, "block_m must be a multiple of 8 (sublane tiling)"

    f32 = jnp.float32
    B, E = embedded.shape
    D = deterministic.shape[1]
    S3 = 3 * stoch

    # --- split first-layer weight (fuses the concat) and last-layer weight (mean/std heads) ---
    w0 = weights[0]
    w_list = [w0[:E, :], w0[E:, :]]
    w_list += [weights[l] for l in range(1, num_layers - 1)]
    w_last = weights[-1]
    w_list += [w_last[:, :stoch], w_last[:, stoch:]]

    # --- pack all biases into a single (L+1, maxw) parameter block ---
    b_split = [biases[l] for l in range(num_layers - 1)] \
        + [biases[-1][:stoch], biases[-1][stoch:]]
    maxw = max(b.shape[0] for b in b_split)
    bias_pack = jnp.stack(
        [jnp.pad(b.astype(f32), (0, maxw - b.shape[0])) for b in b_split], axis=0)

    # --- batch tiling (pad B up to a multiple of the tile so every block is full) ---
    tm = _round_up(min(block_m, _round_up(B, 8)), 8)
    B_pad = _round_up(B, tm)

    def pad_rows(a):
        return jnp.pad(a, ((0, B_pad - B), (0, 0))) if B_pad != B else a

    emb_p = pad_rows(embedded)
    det_p = pad_rows(deterministic)
    eps_p = pad_rows(eps)
    n_blocks = B_pad // tm

    def batch_spec(feat):
        return pl.BlockSpec((tm, feat), lambda i: (i, 0))

    def const_spec(shape):
        return pl.BlockSpec(shape, lambda i: (0,) * len(shape))

    inputs = [emb_p, det_p, eps_p] + list(w_list) + [bias_pack]
    in_specs = [batch_spec(E), batch_spec(D), batch_spec(stoch)]
    in_specs += [const_spec(w.shape) for w in w_list]      # VMEM-resident across steps
    in_specs += [const_spec(bias_pack.shape)]

    kernel = functools.partial(
        representation_kernel, num_layers=num_layers, stoch=stoch,
        min_std=min_std, mxu_dtype=mxu_dtype)

    packed = pl.pallas_call(
        kernel,
        out_shape=jax.ShapeDtypeStruct((B_pad, S3), f32),
        grid_spec=pltpu.PrefetchScalarGridSpec(
            num_scalar_prefetch=0,
            grid=(n_blocks,),
            in_specs=in_specs,
            out_specs=pl.BlockSpec((tm, S3), lambda i: (i, 0)),
        ),
        compiler_params=pltpu.CompilerParams(
            dimension_semantics=("parallel",),          # sharded over v7x's 2 TCs
            vmem_limit_bytes=vmem_limit_bytes,
        ),
    )(*inputs)

    packed = packed[:B]
    mean = packed[:, :stoch]
    std = packed[:, stoch:2 * stoch]
    posterior = packed[:, 2 * stoch:]
    return mean, std, posterior


# -------------------------------- reference (pure JAX) ------------------------------

def representation_reference(embedded, deterministic, eps, weights, biases, *,
                             stoch, min_std=0.1, mxu_dtype=jnp.bfloat16):
    h = jnp.concatenate([embedded, deterministic], axis=-1)
    L = len(weights)
    for l, (w, b) in enumerate(zip(weights, biases)):
        h = jnp.dot(h.astype(mxu_dtype), w.astype(mxu_dtype),
                    preferred_element_type=jnp.float32) + b
        if l < L - 1:
            h = _elu(h)
    mean = h[:, :stoch]
    std = _softplus(h[:, stoch:]) + min_std
    posterior = mean + std * eps
    return mean, std, posterior


# ------------------------------------ main ------------------------------------------

if __name__ == "__main__":
    # Small config consistent with the module:
    #   embedded_state_size=64, deterministic_size=32, hidden_size=32, num_layers=2,
    #   stochastic_size=16, activation=ELU, min_std=0.1, batch=256 (block_m=128 -> 2 grid steps)
    B = 256
    EMB = 64
    DET = 32
    HID = 32
    STOCH = 16
    NUM_LAYERS = 2
    MIN_STD = 0.1

    key = jax.random.PRNGKey(0)
    k_e, k_d, k_eps, k_w = jax.random.split(key, 4)

    embedded = jax.random.normal(k_e, (B, EMB), dtype=jnp.float32)
    deterministic = jax.random.normal(k_d, (B, DET), dtype=jnp.float32)
    eps = jax.random.normal(k_eps, (B, STOCH), dtype=jnp.float32)   # rsample noise

    # deterministic weight init (uniform +- 1/sqrt(fan_in), like nn.Linear default)
    dims = [EMB + DET] + [HID] * (NUM_LAYERS - 1) + [2 * STOCH]
    weights, biases = [], []
    for l in range(NUM_LAYERS):
        k_w, kw, kb = jax.random.split(k_w, 3)
        bound = 1.0 / (dims[l] ** 0.5)
        weights.append(
            jax.random.uniform(kw, (dims[l], dims[l + 1]), jnp.float32, -bound, bound))
        biases.append(
            jax.random.uniform(kb, (dims[l + 1],), jnp.float32, -bound, bound))

    mean, std, posterior = representation_forward(
        embedded, deterministic, eps, weights, biases,
        stoch=STOCH, min_std=MIN_STD, block_m=128)
    jax.block_until_ready(posterior)

    mean_r, std_r, post_r = representation_reference(
        embedded, deterministic, eps, weights, biases,
        stoch=STOCH, min_std=MIN_STD, mxu_dtype=jnp.bfloat16)

    # kernel and reference both use bf16 MXU operands with f32 accumulation; the only
    # difference is accumulation grouping from the split-weight matmuls -> tight tol.
    assert jnp.allclose(mean, mean_r, atol=1e-4, rtol=1e-4)
    assert jnp.allclose(std, std_r, atol=1e-4, rtol=1e-4)
    assert jnp.allclose(posterior, post_r, atol=1e-4, rtol=1e-4)

    print("KERNEL_OK")
</pallas_src>

<mosaic_0001>
module attributes {stable_mosaic.version = 11 : i64} {
  func.func @representation_kernel(%arg0: i32, %arg1: memref<128x64xf32, #tpu.memory_space<vmem>>, %arg2: memref<128x32xf32, #tpu.memory_space<vmem>>, %arg3: memref<128x16xf32, #tpu.memory_space<vmem>>, %arg4: memref<64x32xf32, #tpu.memory_space<vmem>>, %arg5: memref<32x32xf32, #tpu.memory_space<vmem>>, %arg6: memref<32x16xf32, #tpu.memory_space<vmem>>, %arg7: memref<32x16xf32, #tpu.memory_space<vmem>>, %arg8: memref<3x32xf32, #tpu.memory_space<vmem>>, %arg9: memref<128x48xf32, #tpu.memory_space<vmem>>) attributes {dimension_semantics = [#tpu.dimension_semantics<parallel>], iteration_bounds = array<i64: 2>, scalar_prefetch = 0 : i64, scratch_operands = 0 : i64, tpu.core_type = #tpu.core_type<tc>, window_params = [{transform_indices = @transform_0, window_bounds = array<i64: 128, 64>}, {transform_indices = @transform_1, window_bounds = array<i64: 128, 32>}, {transform_indices = @transform_2, window_bounds = array<i64: 128, 16>}, {pipeline_mode = #tpu.pipeline_mode<synchronous>, transform_indices = @transform_3, window_bounds = array<i64: 64, 32>}, {pipeline_mode = #tpu.pipeline_mode<synchronous>, transform_indices = @transform_4, window_bounds = array<i64: 32, 32>}, {pipeline_mode = #tpu.pipeline_mode<synchronous>, transform_indices = @transform_5, window_bounds = array<i64: 32, 16>}, {pipeline_mode = #tpu.pipeline_mode<synchronous>, transform_indices = @transform_6, window_bounds = array<i64: 32, 16>}, {pipeline_mode = #tpu.pipeline_mode<synchronous>, transform_indices = @transform_7, window_bounds = array<i64: 3, 32>}, {transform_indices = @transform_8, window_bounds = array<i64: 128, 48>}]} {
    %c0 = arith.constant 0 : index
    %c0_0 = arith.constant 0 : index
    %0 = vector.load %arg1[%c0, %c0_0] : memref<128x64xf32, #tpu.memory_space<vmem>>, vector<128x64xf32>
    %1 = arith.truncf %0 : vector<128x64xf32> to vector<128x64xbf16>
    %c0_1 = arith.constant 0 : index
    %c0_2 = arith.constant 0 : index
    %2 = vector.load %arg4[%c0_1, %c0_2] : memref<64x32xf32, #tpu.memory_space<vmem>>, vector<64x32xf32>
    %3 = arith.truncf %2 : vector<64x32xf32> to vector<64x32xbf16>
    %cst = arith.constant dense<0.000000e+00> : vector<128x32xf32>
    %4 = tpu.matmul %1, %3, %cst {dimension_numbers = #tpu.dot_dimension_numbers<[1], [0], [0], [1], [0, 0, 1, 1], [], []>} : vector<128x64xbf16>, vector<64x32xbf16>, vector<128x32xf32> -> vector<128x32xf32>
    %c0_3 = arith.constant 0 : index
    %c0_4 = arith.constant 0 : index
    %5 = vector.load %arg2[%c0_3, %c0_4] : memref<128x32xf32, #tpu.memory_space<vmem>>, vector<128x32xf32>
    %6 = arith.truncf %5 : vector<128x32xf32> to vector<128x32xbf16>
    %c0_5 = arith.constant 0 : index
    %c0_6 = arith.constant 0 : index
    %7 = vector.load %arg5[%c0_5, %c0_6] : memref<32x32xf32, #tpu.memory_space<vmem>>, vector<32x32xf32>
    %8 = arith.truncf %7 : vector<32x32xf32> to vector<32x32xbf16>
    %cst_7 = arith.constant dense<0.000000e+00> : vector<128x32xf32>
    %9 = tpu.matmul %6, %8, %cst_7 {dimension_numbers = #tpu.dot_dimension_numbers<[1], [0], [0], [1], [0, 0, 1, 1], [], []>} : vector<128x32xbf16>, vector<32x32xbf16>, vector<128x32xf32> -> vector<128x32xf32>
    %10 = arith.addf %4, %9 : vector<128x32xf32>
    %c0_8 = arith.constant 0 : index
    %c0_9 = arith.constant 0 : index
    %11 = vector.load %arg8[%c0_8, %c0_9] : memref<3x32xf32, #tpu.memory_space<vmem>>, vector<1x32xf32>
    %12 = vector.broadcast %11 : vector<1x32xf32> to vector<128x32xf32>
    %13 = arith.addf %10, %12 : vector<128x32xf32>
    %cst_10 = arith.constant 0.000000e+00 : f32
    %14 = vector.broadcast %cst_10 : f32 to vector<128x32xf32>
    %15 = arith.cmpf ogt, %13, %14 : vector<128x32xf32>
    %cst_11 = arith.constant 0.000000e+00 : f32
    %16 = vector.broadcast %cst_11 : f32 to vector<128x32xf32>
    %17 = arith.minimumf %13, %16 : vector<128x32xf32>
    %18 = math.exp %17 : vector<128x32xf32>
    %cst_12 = arith.constant 1.000000e+00 : f32
    %19 = vector.broadcast %cst_12 : f32 to vector<128x32xf32>
    %20 = arith.subf %18, %19 : vector<128x32xf32>
    %21 = arith.select %15, %13, %20 : vector<128x32xi1>, vector<128x32xf32>
    %22 = arith.truncf %21 : vector<128x32xf32> to vector<128x32xbf16>
    %c0_13 = arith.constant 0 : index
    %c0_14 = arith.constant 0 : index
    %23 = vector.load %arg6[%c0_13, %c0_14] : memref<32x16xf32, #tpu.memory_space<vmem>>, vector<32x16xf32>
    %24 = arith.truncf %23 : vector<32x16xf32> to vector<32x16xbf16>
    %cst_15 = arith.constant dense<0.000000e+00> : vector<128x16xf32>
    %25 = tpu.matmul %22, %24, %cst_15 {dimension_numbers = #tpu.dot_dimension_numbers<[1], [0], [0], [1], [0, 0, 1, 1], [], []>} : vector<128x32xbf16>, vector<32x16xbf16>, vector<128x16xf32> -> vector<128x16xf32>
    %c1 = arith.constant 1 : index
    %c0_16 = arith.constant 0 : index
    %26 = vector.load %arg8[%c1, %c0_16] : memref<3x32xf32, #tpu.memory_space<vmem>>, vector<1x16xf32>
    %27 = vector.broadcast %26 : vector<1x16xf32> to vector<128x16xf32>
    %28 = arith.addf %25, %27 : vector<128x16xf32>
    %29 = arith.truncf %21 : vector<128x32xf32> to vector<128x32xbf16>
    %c0_17 = arith.constant 0 : index
    %c0_18 = arith.constant 0 : index
    %30 = vector.load %arg7[%c0_17, %c0_18] : memref<32x16xf32, #tpu.memory_space<vmem>>, vector<32x16xf32>
    %31 = arith.truncf %30 : vector<32x16xf32> to vector<32x16xbf16>
    %cst_19 = arith.constant dense<0.000000e+00> : vector<128x16xf32>
    %32 = tpu.matmul %29, %31, %cst_19 {dimension_numbers = #tpu.dot_dimension_numbers<[1], [0], [0], [1], [0, 0, 1, 1], [], []>} : vector<128x32xbf16>, vector<32x16xbf16>, vector<128x16xf32> -> vector<128x16xf32>
    %c2 = arith.constant 2 : index
    %c0_20 = arith.constant 0 : index
    %33 = vector.load %arg8[%c2, %c0_20] : memref<3x32xf32, #tpu.memory_space<vmem>>, vector<1x16xf32>
    %34 = vector.broadcast %33 : vector<1x16xf32> to vector<128x16xf32>
    %35 = arith.addf %32, %34 : vector<128x16xf32>
    %cst_21 = arith.constant 0.000000e+00 : f32
    %36 = vector.broadcast %cst_21 : f32 to vector<128x16xf32>
    %37 = arith.maximumf %35, %36 : vector<128x16xf32>
    %38 = math.absf %35 : vector<128x16xf32>
    %cst_22 = arith.constant 0.000000e+00 : f32
    %39 = vector.broadcast %cst_22 : f32 to vector<128x16xf32>
    %40 = arith.subf %39, %38 : vector<128x16xf32>
    %41 = math.exp %40 : vector<128x16xf32>
    %42 = math.log1p %41 : vector<128x16xf32>
    %43 = arith.addf %37, %42 : vector<128x16xf32>
    %cst_23 = arith.constant 1.000000e-01 : f32
    %44 = vector.broadcast %cst_23 : f32 to vector<128x16xf32>
    %45 = arith.addf %43, %44 : vector<128x16xf32>
    %c0_24 = arith.constant 0 : index
    %c0_25 = arith.constant 0 : index
    %46 = vector.load %arg3[%c0_24, %c0_25] : memref<128x16xf32, #tpu.memory_space<vmem>>, vector<128x16xf32>
    %47 = arith.mulf %45, %46 : vector<128x16xf32>
    %48 = arith.addf %28, %47 : vector<128x16xf32>
    %49 = tpu.concatenate %28, %45, %48 in 1 : vector<128x16xf32>, vector<128x16xf32>, vector<128x16xf32> -> vector<128x48xf32>
    %c0_26 = arith.constant 0 : index
    %c0_27 = arith.constant 0 : index
    %50 = vector.load %arg9[%c0_26, %c0_27] : memref<128x48xf32, #tpu.memory_space<vmem>>, vector<128x48xf32>
    tpu.vector_store %arg9[%c0_26, %c0_27], %49 {strides = array<i32>} : memref<128x48xf32, #tpu.memory_space<vmem>>, vector<128x48xf32>,
    return
  }
  func.func @transform_0(%arg0: i32) -> (i32, i32) {
    %c0_i32 = arith.constant 0 : i32
    %c0_i32_0 = arith.constant 0 : i32
    return %arg0, %c0_i32 : i32, i32
  }
  func.func @transform_1(%arg0: i32) -> (i32, i32) {
    %c0_i32 = arith.constant 0 : i32
    %c0_i32_0 = arith.constant 0 : i32
    return %arg0, %c0_i32 : i32, i32
  }
  func.func @transform_2(%arg0: i32) -> (i32, i32) {
    %c0_i32 = arith.constant 0 : i32
    %c0_i32_0 = arith.constant 0 : i32
    return %arg0, %c0_i32 : i32, i32
  }
  func.func @transform_3(%arg0: i32) -> (i32, i32) {
    %c0_i32 = arith.constant 0 : i32
    %c0_i32_0 = arith.constant 0 : i32
    %c0_i32_1 = arith.constant 0 : i32
    return %c0_i32, %c0_i32_0 : i32, i32
  }
  func.func @transform_4(%arg0: i32) -> (i32, i32) {
    %c0_i32 = arith.constant 0 : i32
    %c0_i32_0 = arith.constant 0 : i32
    %c0_i32_1 = arith.constant 0 : i32
    return %c0_i32, %c0_i32_0 : i32, i32
  }
  func.func @transform_5(%arg0: i32) -> (i32, i32) {
    %c0_i32 = arith.constant 0 : i32
    %c0_i32_0 = arith.constant 0 : i32
    %c0_i32_1 = arith.constant 0 : i32
    return %c0_i32, %c0_i32_0 : i32, i32
  }
  func.func @transform_6(%arg0: i32) -> (i32, i32) {
    %c0_i32 = arith.constant 0 : i32
    %c0_i32_0 = arith.constant 0 : i32
    %c0_i32_1 = arith.constant 0 : i32
    return %c0_i32, %c0_i32_0 : i32, i32
  }
  func.func @transform_7(%arg0: i32) -> (i32, i32) {
    %c0_i32 = arith.constant 0 : i32
    %c0_i32_0 = arith.constant 0 : i32
    %c0_i32_1 = arith.constant 0 : i32
    return %c0_i32, %c0_i32_0 : i32, i32
  }
  func.func @transform_8(%arg0: i32) -> (i32, i32) {
    %c0_i32 = arith.constant 0 : i32
    %c0_i32_0 = arith.constant 0 : i32
    return %arg0, %c0_i32 : i32, i32
  }
}

</mosaic_0001>

<bundles_post_ra>
// kernel: tpu_custom_call.1
= control target key start
LH: loop header
LB: loop body
LE: loop exit
PB: predicated region body
PF: predicated region fallthrough
CT: control target
= control target key end

     0   :  { %s1617_s27 = smov 0   ;;  %s2095_s0 = inlined_call_operand.vmem [shape: f32[256,64], index: 0, kind: input, shape index: {}]   ;;  %s2096_s1 = inlined_call_operand.vmem [shape: f32[256,32], index: 1, kind: input, shape index: {}]   ;;  %s2097_s2 = inlined_call_operand.vmem [shape: f32[256,16], index: 2, kind: input, shape index: {}]   ;;  %s2098_s3 = inlined_call_operand.vmem [shape: f32[64,32], index: 3, kind: input, shape index: {}]   ;;  %s2099_s4 = inlined_call_operand.vmem [shape: f32[32,32], index: 4, kind: input, shape index: {}]   ;;  %s2100_s5 = inlined_call_operand.vmem [shape: f32[32,16], index: 5, kind: input, shape index: {}]   ;;  %s2101_s6 = inlined_call_operand.vmem [shape: f32[32,16], index: 6, kind: input, shape index: {}]   ;;  %s2102_s7 = inlined_call_operand.vmem [shape: f32[3,32], index: 7, kind: input, shape index: {}]   ;;  %s2103_s8 = inlined_call_operand.vmem [shape: f32[256,48], index: 8, kind: output, shape index: {}]  }
   0x1 LB: > { %s1390_s28 = sadd.s32 4294967295, %s1568_s27   ;;  %p1394_p0 = scmp.ge.s32.totalorder %s1568_s27, 1  ;;  %s1568_s27 = sphi %s1617_s27, %s18_s27  }
   0x2   : > { %p285_p1 = scmp.lt.s32.totalorder %s1568_s27, 3 }
   0x4   : > { %p286_p2 = pnand %p1394_p0, %p285_p1 }
   0x5   : > { %s1395_s13 = sshll.u32 (!%p286_p2), %s1390_s28, 4  ;;  %s1570_s23 = smov (!%p286_p2), 16  }
   0x6   : > { %289 = sbr.rel (%p286_p2) target bundleno = 592 (0x250), region = 52  ;;  %p330_p3 = scmp.lt.s32.totalorder (!%p286_p2), %s1395_s13, 31 }
   0x7   : > { %s1571_s25 = smov (!%p286_p2), 32  }
   0xb   : > { %v416_v0 = vld [vmem:[%s2099_s4 + $0x10] sm:$0xff]  ;;  %v417_v1 = vld [vmem:[%s2099_s4 + $0x18] sm:$0xff]  ;;  %v414_v5 = vld [vmem:[%s2099_s4] sm:$0xff]  ;;  %s2105_s13 = smov (!%p330_p3, %s1395_s13), 31  ;;  %vm420_vm0 = vcmask 261120   ;;  %vm494_vm1 = vcmask 523264  }
   0xc   : > { %v384_v2 = vld [vmem:[%s2098_s3 + $0x30] sm:$0xff]  ;;  %v419_v3 = vpack.c.bf16 %v417_v1, %v416_v0  ;;  %v385_v4 = vld [vmem:[%s2098_s3 + $0x38] sm:$0xff]  ;;  %v415_v6 = vld [vmem:[%s2099_s4 + $0x8] sm:$0xff]  ;;  %s1649_s24 = sshll.u32 %s2105_s13, 3 }
   0xd   : > { %v389_v7 = vpack.c.bf16 %v385_v4, %v384_v2  ;;  %v382_v8 = vld [vmem:[%s2098_s3 + $0x20] sm:$0xff]  ;;  %v383_v9 = vld [vmem:[%s2098_s3 + $0x28] sm:$0xff]  ;;  %v418_v10 = vpack.c.bf16 %v415_v6, %v414_v5  ;;  %v380_v12 = vld [vmem:[%s2098_s3 + $0x10] sm:$0xff]  ;;  %s1661_s10 = scalar_lea.vmem %s2096_s1, %s1649_s24  ;;  %s1675_s17 = scalar_lea.vmem %s2095_s0, %s1649_s24 }
   0xe   : > { %451 = vmatpush.bf16.msra.mxu0 %v419_v3  ;;  %v388_v11 = vpack.c.bf16 %v383_v9, %v382_v8  ;;  %v381_v13 = vld [vmem:[%s2098_s3 + $0x18] sm:$0xff]  ;;  %v390_v14 = vld [vmem:[%s1661_s10] sm:$0xff]  ;;  %v391_v15 = vld [vmem:[%s1661_s10 + $0x8] sm:$0xff]  ;;  %s1809_s20 = scalar_lea.vmem %s2097_s2, %s1649_s24  ;;  %s1995_s29 = scalar_lea.vmem %s2103_s8, %s1649_s24 }
   0xf   : > { %523 = vmatpush.bf16.msra.mxu1 %v389_v7  ;;  %v406_v16 = vpack.c.bf16 %v391_v15, %v390_v14  ;;  %v387_v17 = vpack.c.bf16 %v381_v13, %v380_v12  ;;  %v378_v18 = vld [vmem:[%s2098_s3] sm:$0xff]  ;;  %v379_v19 = vld [vmem:[%s2098_s3 + $0x8] sm:$0xff]  ;;  %v392_v24 = vld [vmem:[%s1661_s10 + $0x10] sm:$0xff] }
  0x10   : > { %v386_v20 = vpack.c.bf16 %v379_v19, %v378_v18  ;;  %v354_v21 = vld [vmem:[%s1675_s17] sm:$0xff]  ;;  %v355_v22 = vld [vmem:[%s1675_s17 + $0x8] sm:$0xff]  ;;  %v393_v25 = vld [vmem:[%s1661_s10 + $0x18] sm:$0xff] }
  0x11   : > { %v370_v23 = vpack.c.bf16 %v355_v22, %v354_v21  ;;  %v407_v26 = vpack.c.bf16 %v393_v25, %v392_v24  ;;  %v356_v27 = vld [vmem:[%s1675_s17 + $0x10] sm:$0xff]  ;;  %v357_v28 = vld [vmem:[%s1675_s17 + $0x18] sm:$0xff]  ;;  %v394_v30 = vld [vmem:[%s1661_s10 + $0x20] sm:$0xff] }
  0x12   : > { %452 = vmatpush.bf16.msra.mxu0 %v418_v10  ;;  %v371_v29 = vpack.c.bf16 %v357_v28, %v356_v27  ;;  %v395_v31 = vld [vmem:[%s1661_s10 + $0x28] sm:$0xff]  ;;  %v358_v33 = vld [vmem:[%s1675_s17 + $0x20] sm:$0xff]  ;;  %v396_v36 = vld [vmem:[%s1661_s10 + $0x30] sm:$0xff] }
  0x13   : > { %524 = vmatpush.bf16.msra.mxu1 %v388_v11  ;;  %v408_v32 = vpack.c.bf16 %v395_v31, %v394_v30  ;;  %v359_v34 = vld [vmem:[%s1675_s17 + $0x28] sm:$0xff]  ;;  %v397_v37 = vld [vmem:[%s1661_s10 + $0x38] sm:$0xff]  ;;  %v360_v39 = vld [vmem:[%s1675_s17 + $0x30] sm:$0xff] }
  0x14   : > { %v372_v35 = vpack.c.bf16 %v359_v34, %v358_v33  ;;  %v409_v38 = vpack.c.bf16 %v397_v37, %v396_v36  ;;  %v361_v40 = vld [vmem:[%s1675_s17 + $0x38] sm:$0xff]  ;;  %v398_v42 = vld [vmem:[%s1661_s10 + $0x40] sm:$0xff]  ;;  %v399_v43 = vld [vmem:[%s1661_s10 + $0x48] sm:$0xff] }
  0x15   : > { %1403 = vmatmul.msk.bf16.vlgmr.msra.gmra.mxu0 %vm420_vm0, %v406_v16  ;;  %v373_v41 = vpack.c.bf16 %v361_v40, %v360_v39  ;;  %v410_v44 = vpack.c.bf16 %v399_v43, %v398_v42  ;;  %v362_v45 = vld [vmem:[%s1675_s17 + $0x40] sm:$0xff]  ;;  %v363_v46 = vld [vmem:[%s1675_s17 + $0x48] sm:$0xff]  ;;  %v400_v48 = vld [vmem:[%s1661_s10 + $0x50] sm:$0xff] }
  0x16   : > { %v374_v47 = vpack.c.bf16 %v363_v46, %v362_v45  ;;  %v401_v49 = vld [vmem:[%s1661_s10 + $0x58] sm:$0xff]  ;;  %v364_v51 = vld [vmem:[%s1675_s17 + $0x50] sm:$0xff]  ;;  %v402_v54 = vld [vmem:[%s1661_s10 + $0x60] sm:$0xff] }
  0x17   : > { %525 = vmatpush.bf16.msra.mxu1 %v387_v17  ;;  %v411_v50 = vpack.c.bf16 %v401_v49, %v400_v48  ;;  %v365_v52 = vld [vmem:[%s1675_s17 + $0x58] sm:$0xff]  ;;  %v403_v55 = vld [vmem:[%s1661_s10 + $0x68] sm:$0xff]  ;;  %v366_v57 = vld [vmem:[%s1675_s17 + $0x60] sm:$0xff] }
  0x18   : > { %v375_v53 = vpack.c.bf16 %v365_v52, %v364_v51  ;;  %v412_v56 = vpack.c.bf16 %v403_v55, %v402_v54  ;;  %v367_v58 = vld [vmem:[%s1675_s17 + $0x68] sm:$0xff]  ;;  %v404_v60 = vld [vmem:[%s1661_s10 + $0x70] sm:$0xff]  ;;  %v405_v61 = vld [vmem:[%s1661_s10 + $0x78] sm:$0xff] }
  0x19   : > { %v376_v59 = vpack.c.bf16 %v367_v58, %v366_v57  ;;  %v413_v62 = vpack.c.bf16 %v405_v61, %v404_v60  ;;  %v368_v63 = vld [vmem:[%s1675_s17 + $0x70] sm:$0xff]  ;;  %v369_v0 = vld [vmem:[%s1675_s17 + $0x78] sm:$0xff]  ;;  %v690_v9 = vld [vmem:[%s2100_s5] sm:$0xff] }
  0x1a   : > { %v377_v1 = vpack.c.bf16 %v369_v0, %v368_v63  ;;  %v692_v2 = vld [vmem:[%s2100_s5 + $0x10] sm:$0xff]  ;;  %v693_v3 = vld [vmem:[%s2100_s5 + $0x18] sm:$0xff]  ;;  %v691_v10 = vld [vmem:[%s2100_s5 + $0x8] sm:$0xff] }
  0x1b   : > { %526 = vmatpush.bf16.msra.mxu1 %v386_v20  ;;  %v773_v4 = vld [vmem:[%s2101_s6 + $0x10] sm:$0xff]  ;;  %v695_v5 = vpack.c.bf16 %v693_v3, %v692_v2  ;;  %v774_v6 = vld [vmem:[%s2101_s6 + $0x18] sm:$0xff]  ;;  %v771_v11 = vld [vmem:[%s2101_s6] sm:$0xff]  ;;  %v694_v12 = vpack.c.bf16 %v691_v10, %v690_v9 }
  0x1c   : > { %v776_v7 = vpack.c.bf16 %v774_v6, %v773_v4  ;;  %v772_v13 = vld [vmem:[%s2101_s6 + $0x8] sm:$0xff]  ;;  %v1750_v16 = vld [vmem:[%s2102_s7] ss:$0 sm:$0xff] }
  0x1d   : > { %728 = vmatpush.bf16.msra.mxu2 %v695_v5  ;;  %v775_v14 = vpack.c.bf16 %v772_v13, %v771_v11 }
  0x1e   : > { %1411 = vmatmul.msk.bf16.vlgmr.msra.gmra.mxu1 %vm494_vm1, %v370_v23  ;;  %785 = vmatpush.bf16.msra.mxu3 %v776_v7 }
  0x21   : > { %729 = vmatpush.bf16.msra.mxu2 %v694_v12 }
  0x22   : > { %786 = vmatpush.bf16.msra.mxu3 %v775_v14 }
  0x25   : > { %1404 = vmatmul.msk.bf16.gmra.mxu0 %vm420_vm0, %v407_v26 }
  0x2e   : > { %1412 = vmatmul.msk.bf16.gmra.mxu1 %vm494_vm1, %v371_v29 }
  0x35   : > { %1405 = vmatmul.msk.bf16.gmra.mxu0 %vm420_vm0, %v408_v32 }
  0x3e   : > { %1413 = vmatmul.msk.bf16.gmra.mxu1 %vm494_vm1, %v372_v35 }
  0x45   : > { %1406 = vmatmul.msk.bf16.gmra.mxu0 %vm420_vm0, %v409_v38 }
  0x4e   : > { %1414 = vmatmul.msk.bf16.gmra.mxu1 %vm494_vm1, %v373_v41 }
  0x55   : > { %1407 = vmatmul.msk.bf16.gmra.mxu0 %vm420_vm0, %v410_v44 }
  0x5e   : > { %1415 = vmatmul.msk.bf16.gmra.mxu1 %vm494_vm1, %v374_v47 }
  0x65   : > { %1408 = vmatmul.msk.bf16.gmra.mxu0 %vm420_vm0, %v411_v50 }
  0x6e   : > { %1416 = vmatmul.msk.bf16.gmra.mxu1 %vm494_vm1, %v375_v53 }
  0x75   : > { %1409 = vmatmul.msk.bf16.gmra.mxu0 %vm420_vm0, %v412_v56 }
  0x7e   : > { %1417 = vmatmul.msk.bf16.gmra.mxu1 %vm494_vm1, %v376_v59 }
  0x85   : > { %1410 = vmatmul.msk.bf16.gmra.mxu0 %vm420_vm0, %v413_v62 }
  0x8e   : > { %1418 = vmatmul.msk.bf16.gmra.mxu1 %vm494_vm1, %v377_v1 }
  0x92   : > { %v454_v8 = vpop.f32.mrf.mxu0 }
  0x9a   : > { %v456_v15 = vpop.f32.mrf.mxu0 }
  0x9b   : > { %v528_v17 = vpop.f32.mrf.mxu1 }
  0x9c   : > { %v529_v18 = vadd.f32 %v528_v17, %v454_v8 }
  0x9e   : > { %v570_v19 = vadd.f32 %v1750_v16, %v529_v18 }
  0xa0   : > { %v602_v20 = vmin.f32 %v570_v19, 0.0  ;;  %vm586_vm2 = vcmp.gt.f32.partialorder %v570_v19, 0.0 }
  0xa2   : > { %v459_v21 = vpop.f32.mrf.mxu0  ;;  %v618_v23 = vmul.f32 1.442695, %v602_v20 }
  0xa3   : > { %v530_v22 = vpop.f32.mrf.mxu1 }
  0xa4   : > { %v531_v24 = vadd.f32 %v530_v22, %v456_v15  ;;  %1466 = vpow2.f32 %v618_v23 }
  0xa6   : > { %v571_v25 = vadd.f32 %v1750_v16, %v531_v24 }
  0xa8   : > { %v603_v26 = vmin.f32 %v571_v25, 0.0  ;;  %vm587_vm3 = vcmp.gt.f32.partialorder %v571_v25, 0.0 }
  0xaa   : > { %v620_v27 = vmul.f32 1.442695, %v603_v26  ;;  %v461_v28 = vpop.f32.mrf.mxu0  ;;  %v1467_v31 = vpop.eup %1466 }
  0xab   : > { %v533_v29 = vpop.f32.mrf.mxu1  ;;  %v1419_v34 = vadd.f32 -1.0, %v1467_v31 }
  0xac   : > { %1468 = vpow2.f32 %v620_v27  ;;  %v534_v30 = vadd.f32 %v533_v29, %v459_v21 }
  0xad   : > { %v666_v41 = vsel %vm586_vm2, %v570_v19, %v1419_v34 }
  0xae   : > { %v572_v32 = vadd.f32 %v1750_v16, %v534_v30 }
  0xb0   : > { %v604_v33 = vmin.f32 %v572_v32, 0.0  ;;  %vm588_vm4 = vcmp.gt.f32.partialorder %v572_v32, 0.0 }
  0xb2   : > { %v1469_v35 = vpop.eup %1468  ;;  %v464_v36 = vpop.f32.mrf.mxu0  ;;  %v622_v39 = vmul.f32 1.442695, %v604_v33 }
  0xb3   : > { %v535_v37 = vpop.f32.mrf.mxu1  ;;  %v1420_v38 = vadd.f32 -1.0, %v1469_v35 }
  0xb4   : > { %v536_v40 = vadd.f32 %v535_v37, %v461_v28  ;;  %1470 = vpow2.f32 %v622_v39 }
  0xb5   : > { %v667_v42 = vsel %vm587_vm3, %v571_v25, %v1420_v38 }
  0xb6   : > { %v573_v43 = vadd.f32 %v1750_v16, %v536_v40  ;;  %v682_v44 = vpack.c.bf16 %v667_v42, %v666_v41 }
  0xb8   : > { %v605_v45 = vmin.f32 %v573_v43, 0.0  ;;  %1435 = vmatmul.msk.bf16.vlgmr.msra.gmra.mxu2 %vm420_vm0, %v682_v44  ;;  %1443 = vmatmul.msk.bf16.vlgmr.msra.gmra.mxu3 %vm420_vm0, %v682_v44  ;;  %vm589_vm5 = vcmp.gt.f32.partialorder %v573_v43, 0.0 }
  0xba   : > { %v624_v46 = vmul.f32 1.442695, %v605_v45  ;;  %v466_v47 = vpop.f32.mrf.mxu0  ;;  %v1471_v50 = vpop.eup %1470 }
  0xbb   : > { %v538_v48 = vpop.f32.mrf.mxu1  ;;  %v1421_v53 = vadd.f32 -1.0, %v1471_v50 }
  0xbc   : > { %1472 = vpow2.f32 %v624_v46  ;;  %v539_v49 = vadd.f32 %v538_v48, %v464_v36 }
  0xbd   : > { %v668_v60 = vsel %vm588_vm4, %v572_v32, %v1421_v53 }
  0xbe   : > { %v574_v51 = vadd.f32 %v1750_v16, %v539_v49 }
  0xc0   : > { %v606_v52 = vmin.f32 %v574_v51, 0.0  ;;  %vm590_vm6 = vcmp.gt.f32.partialorder %v574_v51, 0.0 }
  0xc2   : > { %v1473_v54 = vpop.eup %1472  ;;  %v469_v55 = vpop.f32.mrf.mxu0  ;;  %v626_v58 = vmul.f32 1.442695, %v606_v52 }
  0xc3   : > { %v540_v56 = vpop.f32.mrf.mxu1  ;;  %v1422_v57 = vadd.f32 -1.0, %v1473_v54 }
  0xc4   : > { %v541_v59 = vadd.f32 %v540_v56, %v466_v47  ;;  %1474 = vpow2.f32 %v626_v58 }
  0xc5   : > { %v669_v61 = vsel %vm589_vm5, %v573_v43, %v1422_v57 }
  0xc6   : > { %v575_v62 = vadd.f32 %v1750_v16, %v541_v59  ;;  %v683_v63 = vpack.c.bf16 %v669_v61, %v668_v60 }
  0xc8   : > { %v607_v0 = vmin.f32 %v575_v62, 0.0  ;;  %1436 = vmatmul.msk.bf16.gmra.mxu2 %vm420_vm0, %v683_v63  ;;  %1444 = vmatmul.msk.bf16.gmra.mxu3 %vm420_vm0, %v683_v63  ;;  %vm591_vm7 = vcmp.gt.f32.partialorder %v575_v62, 0.0 }
  0xca   : > { %v628_v1 = vmul.f32 1.442695, %v607_v0  ;;  %v471_v2 = vpop.f32.mrf.mxu0  ;;  %v1475_v5 = vpop.eup %1474 }
  0xcb   : > { %v543_v3 = vpop.f32.mrf.mxu1  ;;  %v1423_v8 = vadd.f32 -1.0, %v1475_v5 }
  0xcc   : > { %1476 = vpow2.f32 %v628_v1  ;;  %v544_v4 = vadd.f32 %v543_v3, %v469_v55 }
  0xcd   : > { %v670_v15 = vsel %vm590_vm6, %v574_v51, %v1423_v8 }
  0xce   : > { %v576_v6 = vadd.f32 %v1750_v16, %v544_v4 }
  0xd0   : > { %v608_v7 = vmin.f32 %v576_v6, 0.0  ;;  %vm592_vm8 = vcmp.gt.f32.partialorder %v576_v6, 0.0 }
  0xd2   : > { %v1477_v9 = vpop.eup %1476  ;;  %v474_v10 = vpop.f32.mrf.mxu0  ;;  %v630_v13 = vmul.f32 1.442695, %v608_v7 }
  0xd3   : > { %v545_v11 = vpop.f32.mrf.mxu1  ;;  %v1424_v12 = vadd.f32 -1.0, %v1477_v9 }
  0xd4   : > { %v546_v14 = vadd.f32 %v545_v11, %v471_v2  ;;  %1478 = vpow2.f32 %v630_v13 }
  0xd5   : > { %v671_v17 = vsel %vm591_vm7, %v575_v62, %v1424_v12 }
  0xd6   : > { %v577_v18 = vadd.f32 %v1750_v16, %v546_v14  ;;  %v684_v19 = vpack.c.bf16 %v671_v17, %v670_v15 }
  0xd8   : > { %v609_v20 = vmin.f32 %v577_v18, 0.0  ;;  %1437 = vmatmul.msk.bf16.gmra.mxu2 %vm420_vm0, %v684_v19  ;;  %1445 = vmatmul.msk.bf16.gmra.mxu3 %vm420_vm0, %v684_v19  ;;  %vm593_vm9 = vcmp.gt.f32.partialorder %v577_v18, 0.0 }
  0xda   : > { %v632_v21 = vmul.f32 1.442695, %v609_v20  ;;  %v476_v22 = vpop.f32.mrf.mxu0  ;;  %v1479_v25 = vpop.eup %1478 }
  0xdb   : > { %v548_v23 = vpop.f32.mrf.mxu1  ;;  %v1425_v28 = vadd.f32 -1.0, %v1479_v25 }
  0xdc   : > { %1480 = vpow2.f32 %v632_v21  ;;  %v549_v24 = vadd.f32 %v548_v23, %v474_v10 }
  0xdd   : > { %v672_v35 = vsel %vm592_vm8, %v576_v6, %v1425_v28 }
  0xde   : > { %v578_v26 = vadd.f32 %v1750_v16, %v549_v24 }
  0xe0   : > { %v610_v27 = vmin.f32 %v578_v26, 0.0  ;;  %vm594_vm10 = vcmp.gt.f32.partialorder %v578_v26, 0.0 }
  0xe2   : > { %v1481_v29 = vpop.eup %1480  ;;  %v479_v30 = vpop.f32.mrf.mxu0  ;;  %v634_v33 = vmul.f32 1.442695, %v610_v27 }
  0xe3   : > { %v550_v31 = vpop.f32.mrf.mxu1  ;;  %v1426_v32 = vadd.f32 -1.0, %v1481_v29 }
  0xe4   : > { %v551_v34 = vadd.f32 %v550_v31, %v476_v22  ;;  %1482 = vpow2.f32 %v634_v33 }
  0xe5   : > { %v673_v36 = vsel %vm593_vm9, %v577_v18, %v1426_v32 }
  0xe6   : > { %v579_v37 = vadd.f32 %v1750_v16, %v551_v34  ;;  %v685_v38 = vpack.c.bf16 %v673_v36, %v672_v35 }
  0xe8   : > { %v611_v39 = vmin.f32 %v579_v37, 0.0  ;;  %1438 = vmatmul.msk.bf16.gmra.mxu2 %vm420_vm0, %v685_v38  ;;  %1446 = vmatmul.msk.bf16.gmra.mxu3 %vm420_vm0, %v685_v38  ;;  %vm595_vm11 = vcmp.gt.f32.partialorder %v579_v37, 0.0 }
  0xea   : > { %v636_v40 = vmul.f32 1.442695, %v611_v39  ;;  %v481_v41 = vpop.f32.mrf.mxu0  ;;  %v1483_v44 = vpop.eup %1482 }
  0xeb   : > { %v553_v42 = vpop.f32.mrf.mxu1  ;;  %v1427_v47 = vadd.f32 -1.0, %v1483_v44 }
  0xec   : > { %1484 = vpow2.f32 %v636_v40  ;;  %v554_v43 = vadd.f32 %v553_v42, %v479_v30 }
  0xed   : > { %v674_v54 = vsel %vm594_vm10, %v578_v26, %v1427_v47 }
  0xee   : > { %v580_v45 = vadd.f32 %v1750_v16, %v554_v43 }
  0xf0   : > { %v612_v46 = vmin.f32 %v580_v45, 0.0  ;;  %vm596_vm12 = vcmp.gt.f32.partialorder %v580_v45, 0.0 }
  0xf2   : > { %v1485_v48 = vpop.eup %1484  ;;  %v638_v51 = vmul.f32 1.442695, %v612_v46  ;;  %v484_v53 = vpop.f32.mrf.mxu0 }
  0xf3   : > { %v555_v49 = vpop.f32.mrf.mxu1  ;;  %v1428_v50 = vadd.f32 -1.0, %v1485_v48 }
  0xf4   : > { %v556_v52 = vadd.f32 %v555_v49, %v481_v41  ;;  %1486 = vpow2.f32 %v638_v51 }
  0xf5   : > { %v675_v55 = vsel %vm595_vm11, %v579_v37, %v1428_v50 }
  0xf6   : > { %v581_v56 = vadd.f32 %v1750_v16, %v556_v52  ;;  %v686_v57 = vpack.c.bf16 %v675_v55, %v674_v54 }
  0xf8   : > { %v613_v58 = vmin.f32 %v581_v56, 0.0  ;;  %1439 = vmatmul.msk.bf16.gmra.mxu2 %vm420_vm0, %v686_v57  ;;  %1447 = vmatmul.msk.bf16.gmra.mxu3 %vm420_vm0, %v686_v57  ;;  %vm597_vm13 = vcmp.gt.f32.partialorder %v581_v56, 0.0 }
  0xfa   : > { %v640_v59 = vmul.f32 1.442695, %v613_v58  ;;  %v1487_v62 = vpop.eup %1486  ;;  %v486_v0 = vpop.f32.mrf.mxu0 }
  0xfb   : > { %v558_v60 = vpop.f32.mrf.mxu1  ;;  %v1429_v2 = vadd.f32 -1.0, %v1487_v62 }
  0xfc   : > { %1488 = vpow2.f32 %v640_v59  ;;  %v559_v61 = vadd.f32 %v558_v60, %v484_v53 }
  0xfd   : > { %v676_v8 = vsel %vm596_vm12, %v580_v45, %v1429_v2 }
  0xfe   : > { %v582_v63 = vadd.f32 %v1750_v16, %v559_v61 }
 0x100   : > { %v614_v1 = vmin.f32 %v582_v63, 0.0  ;;  %vm598_vm14 = vcmp.gt.f32.partialorder %v582_v63, 0.0 }
 0x102   : > { %v1489_v3 = vpop.eup %1488  ;;  %v642_v6 = vmul.f32 1.442695, %v614_v1  ;;  %v489_v13 = vpop.f32.mrf.mxu0 }
 0x103   : > { %v560_v4 = vpop.f32.mrf.mxu1  ;;  %v1430_v5 = vadd.f32 -1.0, %v1489_v3 }
 0x104   : > { %v561_v7 = vadd.f32 %v560_v4, %v486_v0  ;;  %1490 = vpow2.f32 %v642_v6 }
 0x105   : > { %v677_v9 = vsel %vm597_vm13, %v581_v56, %v1430_v5 }
 0x106   : > { %v583_v10 = vadd.f32 %v1750_v16, %v561_v7  ;;  %v687_v11 = vpack.c.bf16 %v677_v9, %v676_v8 }
 0x108   : > { %v615_v12 = vmin.f32 %v583_v10, 0.0  ;;  %1440 = vmatmul.msk.bf16.gmra.mxu2 %vm420_vm0, %v687_v11  ;;  %1448 = vmatmul.msk.bf16.gmra.mxu3 %vm420_vm0, %v687_v11  ;;  %vm599_vm15 = vcmp.gt.f32.partialorder %v583_v10, 0.0  ;;  %v1815_v11 = vld [vmem:[%s2102_s7 + $0x1] ss:$0 sm:$0xff] }
 0x10a   : > { %v644_v14 = vmul.f32 1.442695, %v615_v12  ;;  %v1491_v18 = vpop.eup %1490  ;;  %v491_v23 = vpop.f32.mrf.mxu0 }
 0x10b   : > { %v563_v15 = vpop.f32.mrf.mxu1  ;;  %v1431_v21 = vadd.f32 -1.0, %v1491_v18 }
 0x10c   : > { %1492 = vpow2.f32 %v644_v14  ;;  %v564_v17 = vadd.f32 %v563_v15, %v489_v13  ;;  %v1084_v15 = vld [vmem:[%s1809_s20] sm:$0xff] }
 0x10d   : > { %v678_v28 = vsel %vm598_vm14, %v582_v63, %v1431_v21 }
 0x10e   : > { %v584_v19 = vadd.f32 %v1750_v16, %v564_v17 }
 0x110   : > { %v616_v20 = vmin.f32 %v584_v19, 0.0  ;;  %vm600_vm1 = vcmp.gt.f32.partialorder %v584_v19, 0.0 }
 0x112   : > { %v1493_v22 = vpop.eup %1492  ;;  %v646_v26 = vmul.f32 1.442695, %v616_v20 }
 0x113   : > { %v565_v24 = vpop.f32.mrf.mxu1  ;;  %v1432_v25 = vadd.f32 -1.0, %v1493_v22 }
 0x114   : > { %v566_v27 = vadd.f32 %v565_v24, %v491_v23  ;;  %1494 = vpow2.f32 %v646_v26 }
 0x115   : > { %v679_v29 = vsel %vm599_vm15, %v583_v10, %v1432_v25 }
 0x116   : > { %v585_v30 = vadd.f32 %v1750_v16, %v566_v27  ;;  %v688_v31 = vpack.c.bf16 %v679_v29, %v678_v28  ;;  %v1787_v16 = vld [vmem:[%s2102_s7 + $0x2] ss:$0 sm:$0xff] }
 0x118   : > { %v617_v32 = vmin.f32 %v585_v30, 0.0  ;;  %1441 = vmatmul.msk.bf16.gmra.mxu2 %vm420_vm0, %v688_v31  ;;  %1449 = vmatmul.msk.bf16.gmra.mxu3 %vm420_vm0, %v688_v31  ;;  %vm601_vm2 = vcmp.gt.f32.partialorder %v585_v30, 0.0 }
 0x11a   : > { %v648_v33 = vmul.f32 1.442695, %v617_v32  ;;  %v1495_v34 = vpop.eup %1494 }
 0x11b   : > { %v1433_v35 = vadd.f32 -1.0, %v1495_v34 }
 0x11c   : > { %1496 = vpow2.f32 %v648_v33 }
 0x11d   : > { %v680_v38 = vsel %vm600_vm1, %v584_v19, %v1433_v35 }
 0x122   : > { %v1497_v36 = vpop.eup %1496 }
 0x123   : > { %v1434_v37 = vadd.f32 -1.0, %v1497_v36 }
 0x125   : > { %v681_v39 = vsel %vm601_vm2, %v585_v30, %v1434_v37 }
 0x126   : > { %v689_v40 = vpack.c.bf16 %v681_v39, %v680_v38  ;;  %v1085_v38 = vld [vmem:[%s1809_s20 + $0x8] sm:$0xff] }
 0x128   : > { %1442 = vmatmul.msk.bf16.gmra.mxu2 %vm420_vm0, %v689_v40  ;;  %1450 = vmatmul.msk.bf16.gmra.mxu3 %vm420_vm0, %v689_v40 }
 0x13b   : > { %v731_v41 = vpop.f32.mrf.mxu2  ;;  %v788_v42 = vpop.f32.mrf.mxu3 }
 0x13c   : > { %v789_v43 = vadd.f32 %v1787_v16, %v788_v42  ;;  %v1821_v23 = vadd.f32 %v1815_v11, %v731_v41 }
 0x13e   : > { %v844_v44 = vand.u32 2147483647, %v789_v43  ;;  %v828_v8 = vmax.f32 %v789_v43, 0.0 }
 0x140   : > { %v860_v45 = vsub.f32 0.0, %v844_v44 }
 0x142   : > { %v876_v46 = vmul.f32 1.442695, %v860_v45 }
 0x143   : > { %v790_v47 = vpop.f32.mrf.mxu3  ;;  %v1790_v48 = vpop.f32.mrf.mxu2 }
 0x144   : > { %1498 = vpow2.f32 %v876_v46  ;;  %v1793_v49 = vadd.f32 %v1787_v16, %v790_v47  ;;  %v1836_v45 = vadd.f32 %v1815_v11, %v1790_v48 }
 0x146   : > { %v845_v50 = vand.u32 2147483647, %v1793_v49  ;;  %v829_v31 = vmax.f32 %v1793_v49, 0.0 }
 0x148   : > { %v861_v51 = vsub.f32 0.0, %v845_v50 }
 0x14a   : > { %v1499_v52 = vpop.eup %1498  ;;  %v878_v53 = vmul.f32 1.442695, %v861_v51 }
 0x14b   : > { %v793_v54 = vpop.f32.mrf.mxu3  ;;  %v908_v55 = vadd.f32 1.0, %v1499_v52  ;;  %v911_v56 = vmul.f32 -0.5, %v1499_v52  ;;  %v1799_v58 = vpop.f32.mrf.mxu2  ;;  %v914_v62 = vand.u32 2147483647, %v1499_v52 }
 0x14c   : > { %1500 = vpow2.f32 %v878_v53  ;;  %v1797_v57 = vadd.f32 %v1787_v16, %v793_v54 }
 0x14d   : > { %1502 = vlog2.f32 %v908_v55  ;;  %v912_v60 = vadd.f32 1.0, %v911_v56  ;;  %vm915_vm3 = vcmp.lt.f32.partialorder %v914_v62, 0.0004427343 }
 0x14e   : > { %v846_v59 = vand.u32 2147483647, %v1797_v57  ;;  %v830_v54 = vmax.f32 %v1797_v57, 0.0  ;;  %v1849_v57 = vadd.f32 %v1815_v11, %v1799_v58 }
 0x14f   : > { %v913_v3 = vmul.f32 %v1499_v52, %v912_v60 }
 0x150   : > { %v862_v61 = vsub.f32 0.0, %v846_v59 }
 0x152   : > { %v1501_v63 = vpop.eup %1500  ;;  %v880_v0 = vmul.f32 1.442695, %v862_v61  ;;  %v1086_v61 = vld [vmem:[%s1809_s20 + $0x10] sm:$0xff] }
 0x153   : > { %v1503_v1 = vpop.eup %1502  ;;  %v795_v2 = vpop.f32.mrf.mxu3  ;;  %v917_v4 = vadd.f32 1.0, %v1501_v63  ;;  %v920_v7 = vmul.f32 -0.5, %v1501_v63  ;;  %v923_v19 = vand.u32 2147483647, %v1501_v63 }
 0x154   : > { %1504 = vpow2.f32 %v880_v0  ;;  %v1803_v5 = vadd.f32 %v1787_v16, %v795_v2  ;;  %v910_v6 = vmul.f32 0.6931472, %v1503_v1  ;;  %v1817_v13 = vpop.f32.mrf.mxu2 }
 0x155   : > { %1506 = vlog2.f32 %v917_v4  ;;  %v921_v17 = vadd.f32 1.0, %v920_v7  ;;  %vm924_vm4 = vcmp.lt.f32.partialorder %v923_v19, 0.0004427343 }
 0x156   : > { %v847_v9 = vand.u32 2147483647, %v1803_v5  ;;  %v916_v10 = vsel %vm915_vm3, %v913_v3, %v910_v6 }
 0x157   : > { %v1052_v12 = vadd.f32 %v916_v10, %v828_v8  ;;  %v922_v30 = vmul.f32 %v1501_v63, %v921_v17 }
 0x158   : > { %v863_v14 = vsub.f32 0.0, %v847_v9 }
 0x159   : > { %v1068_v18 = vadd.f32 0.1, %v1052_v12 }
 0x15a   : > { %v1505_v20 = vpop.eup %1504  ;;  %v882_v21 = vmul.f32 1.442695, %v863_v14 }
 0x15b   : > { %v1507_v22 = vpop.eup %1506  ;;  %v798_v24 = vpop.f32.mrf.mxu3  ;;  %1148 = vrot.lane.b32.xlu0 %v1068_v18, %s1570_s23  ;;  %v1100_v25 = vmul.f32 %v1084_v15, %v1068_v18  ;;  %v926_v26 = vadd.f32 1.0, %v1505_v20  ;;  %v929_v27 = vmul.f32 -0.5, %v1505_v20  ;;  %v932_v40 = vand.u32 2147483647, %v1505_v20 }
 0x15c   : > { %1508 = vpow2.f32 %v882_v21  ;;  %v1825_v28 = vadd.f32 %v1787_v16, %v798_v24  ;;  %v919_v29 = vmul.f32 0.6931472, %v1507_v22  ;;  %v1832_v43 = vpop.f32.mrf.mxu2  ;;  %v831_v15 = vmax.f32 %v1803_v5, 0.0 }
 0x15d   : > { %v1116_v32 = vadd.f32 %v1100_v25, %v1821_v23  ;;  %1510 = vlog2.f32 %v926_v26  ;;  %v930_v36 = vadd.f32 1.0, %v929_v27  ;;  %vm933_vm5 = vcmp.lt.f32.partialorder %v932_v40, 0.0004427343  ;;  %v1087_v27 = vld [vmem:[%s1809_s20 + $0x18] sm:$0xff] }
 0x15e   : > { %v848_v33 = vand.u32 2147483647, %v1825_v28  ;;  %v925_v34 = vsel %vm924_vm4, %v922_v30, %v919_v29  ;;  %v1872_v40 = vadd.f32 %v1815_v11, %v1817_v13  ;;  %vm1260_vm4 = vcmask 130048  }
 0x15f   : > { %1212 = vrot.lane.b32.xlu1 %v1116_v32, %s1571_s25  ;;  %v1053_v35 = vadd.f32 %v925_v34, %v829_v31  ;;  %v931_v49 = vmul.f32 %v1505_v20, %v930_v36 }
 0x160   : > { %v864_v37 = vsub.f32 0.0, %v848_v33 }
 0x161   : > { %v1069_v39 = vadd.f32 0.1, %v1053_v35  ;;  %v832_v35 = vmax.f32 %v1825_v28, 0.0 }
 0x162   : > { %v1509_v41 = vpop.eup %1508  ;;  %v884_v42 = vmul.f32 1.442695, %v864_v37 }
 0x163   : > { %v1511_v44 = vpop.eup %1510  ;;  %v800_v46 = vpop.f32.mrf.mxu3  ;;  %1150 = vrot.lane.b32.xlu0 %v1069_v39, %s1570_s23  ;;  %v1101_v47 = vmul.f32 %v1085_v38, %v1069_v39  ;;  %v935_v50 = vadd.f32 1.0, %v1509_v41  ;;  %v938_v53 = vmul.f32 -0.5, %v1509_v41  ;;  %v941_v0 = vand.u32 2147483647, %v1509_v41 }
 0x164   : > { %1512 = vpow2.f32 %v884_v42  ;;  %v1840_v51 = vadd.f32 %v1787_v16, %v800_v46  ;;  %v928_v52 = vmul.f32 0.6931472, %v1511_v44  ;;  %v1852_v9 = vpop.f32.mrf.mxu2 }
 0x165   : > { %v1117_v55 = vadd.f32 %v1101_v47, %v1836_v45  ;;  %1514 = vlog2.f32 %v935_v50  ;;  %v939_v62 = vadd.f32 1.0, %v938_v53  ;;  %vm942_vm6 = vcmp.lt.f32.partialorder %v941_v0, 0.0004427343  ;;  %v1088_v50 = vld [vmem:[%s1809_s20 + $0x20] sm:$0xff] }
 0x166   : > { %v849_v48 = vand.u32 2147483647, %v1840_v51  ;;  %v934_v56 = vsel %vm933_vm5, %v931_v49, %v928_v52  ;;  %v1885_v0 = vadd.f32 %v1815_v11, %v1832_v43  ;;  %vm1293_vm5 = vcmask 392192  }
 0x167   : > { %1214 = vrot.lane.b32.xlu2 %v1117_v55, %s1571_s25  ;;  %v1054_v59 = vadd.f32 %v934_v56, %v830_v54  ;;  %v940_v14 = vmul.f32 %v1509_v41, %v939_v62 }
 0x168   : > { %v865_v60 = vsub.f32 0.0, %v849_v48 }
 0x169   : > { %v1070_v63 = vadd.f32 0.1, %v1054_v59 }
 0x16a   : > { %v1513_v1 = vpop.eup %1512  ;;  %v886_v2 = vmul.f32 1.442695, %v865_v60 }
 0x16b   : > { %v1515_v3 = vpop.eup %1514  ;;  %v944_v4 = vadd.f32 1.0, %v1513_v1  ;;  %v947_v6 = vmul.f32 -0.5, %v1513_v1  ;;  %v803_v7 = vpop.f32.mrf.mxu3  ;;  %1152 = vrot.lane.b32.xlu1 %v1070_v63, %s1570_s23  ;;  %v1102_v8 = vmul.f32 %v1086_v61, %v1070_v63  ;;  %v950_v22 = vand.u32 2147483647, %v1513_v1 }
 0x16c   : > { %1516 = vpow2.f32 %v886_v2  ;;  %v1855_v10 = vadd.f32 %v1787_v16, %v803_v7  ;;  %v937_v12 = vmul.f32 0.6931472, %v1515_v3  ;;  %v1867_v38 = vpop.f32.mrf.mxu2  ;;  %v833_v61 = vmax.f32 %v1840_v51, 0.0  ;;  %v1089_v3 = vld [vmem:[%s1809_s20 + $0x28] sm:$0xff] }
 0x16d   : > { %1518 = vlog2.f32 %v944_v4  ;;  %v1118_v58 = vadd.f32 %v1102_v8, %v1849_v57  ;;  %v948_v19 = vadd.f32 1.0, %v947_v6  ;;  %vm951_vm7 = vcmp.lt.f32.partialorder %v950_v22, 0.0004427343 }
 0x16e   : > { %v850_v17 = vand.u32 2147483647, %v1855_v10  ;;  %v943_v18 = vsel %vm942_vm6, %v940_v14, %v937_v12 }
 0x16f   : > { %1216 = vrot.lane.b32.xlu0 %v1118_v58, %s1571_s25  ;;  %v1055_v20 = vadd.f32 %v943_v18, %v831_v15  ;;  %v949_v30 = vmul.f32 %v1513_v1, %v948_v19  ;;  %v1891_v58 = vadd.f32 %v1815_v11, %v1852_v9 }
 0x170   : > { %v866_v21 = vsub.f32 0.0, %v850_v17 }
 0x171   : > { %v1071_v24 = vadd.f32 0.1, %v1055_v20 }
 0x172   : > { %v1517_v25 = vpop.eup %1516  ;;  %v888_v26 = vmul.f32 1.442695, %v866_v21 }
 0x173   : > { %v1519_v29 = vpop.eup %1518  ;;  %v953_v5 = vadd.f32 1.0, %v1517_v25  ;;  %v805_v31 = vpop.f32.mrf.mxu3  ;;  %1154 = vrot.lane.b32.xlu1 %v1071_v24, %s1570_s23  ;;  %v956_v33 = vmul.f32 -0.5, %v1517_v25  ;;  %v1103_v36 = vmul.f32 %v1087_v27, %v1071_v24  ;;  %v959_v47 = vand.u32 2147483647, %v1517_v25 }
 0x174   : > { %v946_v32 = vmul.f32 0.6931472, %v1519_v29  ;;  %1520 = vpow2.f32 %v888_v26  ;;  %v1864_v34 = vadd.f32 %v1787_v16, %v805_v31  ;;  %v748_v4 = vpop.f32.mrf.mxu2 }
 0x175   : > { %1522 = vlog2.f32 %v953_v5  ;;  %v957_v42 = vadd.f32 1.0, %v956_v33  ;;  %v1119_v49 = vadd.f32 %v1103_v36, %v1872_v40  ;;  %vm960_vm8 = vcmp.lt.f32.partialorder %v959_v47, 0.0004427343  ;;  %v1090_v5 = vld [vmem:[%s1809_s20 + $0x30] sm:$0xff] }
 0x176   : > { %v952_v37 = vsel %vm951_vm7, %v949_v30, %v946_v32  ;;  %v851_v39 = vand.u32 2147483647, %v1864_v34 }
 0x177   : > { %v1056_v41 = vadd.f32 %v952_v37, %v832_v35  ;;  %v958_v56 = vmul.f32 %v1517_v25, %v957_v42  ;;  %v834_v25 = vmax.f32 %v1855_v10, 0.0  ;;  %v1904_v10 = vadd.f32 %v1815_v11, %v1867_v38 }
 0x178   : > { %v867_v44 = vsub.f32 0.0, %v851_v39 }
 0x179   : > { %v1072_v46 = vadd.f32 0.1, %v1056_v41 }
 0x17a   : > { %v1521_v28 = vpop.eup %1520  ;;  %v890_v52 = vmul.f32 1.442695, %v867_v44 }
 0x17b   : > { %v1523_v53 = vpop.eup %1522  ;;  %v808_v54 = vpop.f32.mrf.mxu3  ;;  %1156 = vrot.lane.b32.xlu2 %v1072_v46, %s1570_s23  ;;  %1218 = vrot.lane.b32.xlu1 %v1119_v49, %s1571_s25  ;;  %v962_v55 = vadd.f32 1.0, %v1521_v28  ;;  %v965_v13 = vmul.f32 -0.5, %v1521_v28  ;;  %v1104_v60 = vmul.f32 %v1088_v50, %v1072_v46  ;;  %v968_v12 = vand.u32 2147483647, %v1521_v28 }
 0x17c   : > { %v955_v48 = vmul.f32 0.6931472, %v1523_v53  ;;  %1524 = vpow2.f32 %v890_v52  ;;  %v1879_v59 = vadd.f32 %v1787_v16, %v808_v54  ;;  %v751_v35 = vpop.f32.mrf.mxu2 }
 0x17d   : > { %1526 = vlog2.f32 %v962_v55  ;;  %v966_v2 = vadd.f32 1.0, %v965_v13  ;;  %v1120_v7 = vadd.f32 %v1104_v60, %v1885_v0  ;;  %vm969_vm9 = vcmp.lt.f32.partialorder %v968_v12, 0.0004427343  ;;  %v1091_v13 = vld [vmem:[%s1809_s20 + $0x38] sm:$0xff] }
 0x17e   : > { %v961_v62 = vsel %vm960_vm8, %v958_v56, %v955_v48  ;;  %v852_v63 = vand.u32 2147483647, %v1879_v59 }
 0x17f   : > { %v1057_v1 = vadd.f32 %v961_v62, %v833_v61  ;;  %v967_v19 = vmul.f32 %v1521_v28, %v966_v2  ;;  %v835_v28 = vmax.f32 %v1864_v34, 0.0  ;;  %v1917_v62 = vadd.f32 %v1815_v11, %v748_v4 }
 0x180   : > { %v868_v6 = vsub.f32 0.0, %v852_v63 }
 0x181   : > { %v1073_v8 = vadd.f32 0.1, %v1057_v1 }
 0x182   : > { %v1525_v14 = vpop.eup %1524  ;;  %v892_v51 = vmul.f32 1.442695, %v868_v6 }
 0x183   : > { %v1527_v15 = vpop.eup %1526  ;;  %v1105_v17 = vmul.f32 %v1089_v3, %v1073_v8  ;;  %v971_v18 = vadd.f32 1.0, %v1525_v14  ;;  %v810_v43 = vpop.f32.mrf.mxu3  ;;  %1220 = vrot.lane.b32.xlu2 %v1120_v7, %s1571_s25  ;;  %v974_v20 = vmul.f32 -0.5, %v1525_v14  ;;  %v977_v31 = vand.u32 2147483647, %v1525_v14 }
 0x184   : > { %1528 = vpow2.f32 %v892_v51  ;;  %v1895_v21 = vadd.f32 %v1787_v16, %v810_v43  ;;  %v964_v22 = vmul.f32 0.6931472, %v1527_v15  ;;  %v753_v7 = vpop.f32.mrf.mxu2  ;;  %v1092_v43 = vld [vmem:[%s1809_s20 + $0x40] sm:$0xff] }
 0x185   : > { %v1121_v24 = vadd.f32 %v1105_v17, %v1891_v58  ;;  %1530 = vlog2.f32 %v971_v18  ;;  %v975_v29 = vadd.f32 1.0, %v974_v20  ;;  %vm978_vm10 = vcmp.lt.f32.partialorder %v977_v31, 0.0004427343 }
 0x186   : > { %v853_v9 = vand.u32 2147483647, %v1895_v21  ;;  %v970_v26 = vsel %vm969_vm9, %v967_v19, %v964_v22 }
 0x187   : > { %1222 = vrot.lane.b32.xlu0 %v1121_v24, %s1571_s25  ;;  %v1058_v27 = vadd.f32 %v970_v26, %v834_v25  ;;  %v976_v47 = vmul.f32 %v1525_v14, %v975_v29  ;;  %v836_v14 = vmax.f32 %v1879_v59, 0.0 }
 0x188   : > { %v869_v30 = vsub.f32 0.0, %v853_v9  ;;  %v1929_v9 = vadd.f32 %v1815_v11, %v751_v35 }
 0x189   : > { %v1074_v32 = vadd.f32 0.1, %v1058_v27 }
 0x18a   : > { %v1529_v33 = vpop.eup %1528  ;;  %v894_v36 = vmul.f32 1.442695, %v869_v30 }
 0x18b   : > { %v1531_v37 = vpop.eup %1530  ;;  %v980_v39 = vadd.f32 1.0, %v1529_v33  ;;  %v983_v41 = vmul.f32 -0.5, %v1529_v33  ;;  %v813_v42 = vpop.f32.mrf.mxu3  ;;  %1158 = vrot.lane.b32.xlu2 %v1073_v8, %s1570_s23  ;;  %v1106_v44 = vmul.f32 %v1090_v5, %v1074_v32  ;;  %v986_v56 = vand.u32 2147483647, %v1529_v33 }
 0x18c   : > { %v973_v46 = vmul.f32 0.6931472, %v1531_v37  ;;  %1532 = vpow2.f32 %v894_v36  ;;  %v1908_v49 = vadd.f32 %v1787_v16, %v813_v42  ;;  %v756_v37 = vpop.f32.mrf.mxu2 }
 0x18d   : > { %1534 = vlog2.f32 %v980_v39  ;;  %v1122_v38 = vadd.f32 %v1106_v44, %v1904_v10  ;;  %v984_v54 = vadd.f32 1.0, %v983_v41  ;;  %vm987_vm11 = vcmp.lt.f32.partialorder %v986_v56, 0.0004427343 }
 0x18e   : > { %v979_v50 = vsel %vm978_vm10, %v976_v47, %v973_v46  ;;  %v854_v52 = vand.u32 2147483647, %v1908_v49  ;;  %v1093_v46 = vld [vmem:[%s1809_s20 + $0x48] sm:$0xff] }
 0x18f   : > { %v1059_v53 = vadd.f32 %v979_v50, %v835_v28  ;;  %1160 = vrot.lane.b32.xlu0 %v1074_v32, %s1570_s23  ;;  %1224 = vrot.lane.b32.xlu1 %v1122_v38, %s1571_s25  ;;  %v985_v63 = vmul.f32 %v1529_v33, %v984_v54  ;;  %v837_v33 = vmax.f32 %v1895_v21, 0.0 }
 0x190   : > { %v870_v55 = vsub.f32 0.0, %v854_v52  ;;  %v1941_v52 = vadd.f32 %v1815_v11, %v753_v7 }
 0x191   : > { %v1075_v48 = vadd.f32 0.1, %v1059_v53 }
 0x192   : > { %v1533_v60 = vpop.eup %1532  ;;  %v896_v61 = vmul.f32 1.442695, %v870_v55 }
 0x193   : > { %v1535_v34 = vpop.eup %1534  ;;  %v815_v1 = vpop.f32.mrf.mxu3  ;;  %v1107_v2 = vmul.f32 %v1091_v13, %v1075_v48  ;;  %v989_v3 = vadd.f32 1.0, %v1533_v60  ;;  %v992_v12 = vmul.f32 -0.5, %v1533_v60  ;;  %v995_v22 = vand.u32 2147483647, %v1533_v60 }
 0x194   : > { %v982_v6 = vmul.f32 0.6931472, %v1535_v34  ;;  %1536 = vpow2.f32 %v896_v61  ;;  %v1920_v8 = vadd.f32 %v1787_v16, %v815_v1  ;;  %v838_v61 = vmax.f32 %v1908_v49, 0.0 }
 0x195   : > { %v1123_v51 = vadd.f32 %v1107_v2, %v1917_v62  ;;  %1538 = vlog2.f32 %v989_v3  ;;  %v993_v19 = vadd.f32 1.0, %v992_v12  ;;  %vm996_vm12 = vcmp.lt.f32.partialorder %v995_v22, 0.0004427343  ;;  %v758_v3 = vpop.f32.mrf.mxu2  ;;  %v1094_v12 = vld [vmem:[%s1809_s20 + $0x50] sm:$0xff] }
 0x196   : > { %v988_v4 = vsel %vm987_vm11, %v985_v63, %v982_v6  ;;  %v855_v15 = vand.u32 2147483647, %v1920_v8 }
 0x197   : > { %v1060_v17 = vadd.f32 %v988_v4, %v836_v14  ;;  %1226 = vrot.lane.b32.xlu2 %v1123_v51, %s1571_s25  ;;  %1162 = vrot.lane.b32.xlu1 %v1075_v48, %s1570_s23  ;;  %v994_v32 = vmul.f32 %v1533_v60, %v993_v19 }
 0x198   : > { %v871_v18 = vsub.f32 0.0, %v855_v15 }
 0x199   : > { %v1076_v20 = vadd.f32 0.1, %v1060_v17  ;;  %v1953_v17 = vadd.f32 %v1815_v11, %v756_v37 }
 0x19a   : > { %v1537_v24 = vpop.eup %1536  ;;  %v898_v25 = vmul.f32 1.442695, %v871_v18 }
 0x19b   : > { %v1539_v59 = vpop.eup %1538  ;;  %v998_v26 = vadd.f32 1.0, %v1537_v24  ;;  %v1001_v27 = vmul.f32 -0.5, %v1537_v24  ;;  %v818_v29 = vpop.f32.mrf.mxu3  ;;  %v1108_v30 = vmul.f32 %v1092_v43, %v1076_v20  ;;  %v1004_v47 = vand.u32 2147483647, %v1537_v24 }
 0x19c   : > { %1540 = vpow2.f32 %v898_v25  ;;  %v1932_v5 = vadd.f32 %v1787_v16, %v818_v29  ;;  %v991_v31 = vmul.f32 0.6931472, %v1539_v59  ;;  %v839_v59 = vmax.f32 %v1920_v8, 0.0 }
 0x19d   : > { %1542 = vlog2.f32 %v998_v26  ;;  %v1124_v36 = vadd.f32 %v1108_v30, %v1929_v9  ;;  %v1002_v41 = vadd.f32 1.0, %v1001_v27  ;;  %vm1005_vm13 = vcmp.lt.f32.partialorder %v1004_v47, 0.0004427343 }
 0x19e   : > { %v856_v35 = vand.u32 2147483647, %v1932_v5  ;;  %v997_v39 = vsel %vm996_vm12, %v994_v32, %v991_v31 }
 0x19f   : > { %1228 = vrot.lane.b32.xlu0 %v1124_v36, %s1571_s25  ;;  %1164 = vrot.lane.b32.xlu2 %v1076_v20, %s1570_s23  ;;  %v1061_v42 = vadd.f32 %v997_v39, %v837_v33  ;;  %v1003_v53 = vmul.f32 %v1537_v24, %v1002_v41  ;;  %v1095_v33 = vld [vmem:[%s1809_s20 + $0x58] sm:$0xff]  ;;  %v761_v39 = vpop.f32.mrf.mxu2 }
 0x1a0   : > { %v872_v44 = vsub.f32 0.0, %v856_v35 }
 0x1a1   : > { %v1077_v28 = vadd.f32 0.1, %v1061_v42  ;;  %v1965_v42 = vadd.f32 %v1815_v11, %v758_v3  ;;  %v1977_v3 = vadd.f32 %v1815_v11, %v761_v39  ;;  %v1097_v39 = vld [vmem:[%s1809_s20 + $0x68] sm:$0xff] }
 0x1a2   : > { %v1541_v38 = vpop.eup %1540  ;;  %v900_v21 = vmul.f32 1.442695, %v872_v44 }
 0x1a3   : > { %v1543_v50 = vpop.eup %1542  ;;  %v1007_v54 = vadd.f32 1.0, %v1541_v38  ;;  %v820_v55 = vpop.f32.mrf.mxu3  ;;  %v1109_v13 = vmul.f32 %v1093_v46, %v1077_v28  ;;  %v1010_v56 = vmul.f32 -0.5, %v1541_v38  ;;  %v1013_v51 = vand.u32 2147483647, %v1541_v38 }
 0x1a4   : > { %v1000_v48 = vmul.f32 0.6931472, %v1543_v50  ;;  %1544 = vpow2.f32 %v900_v21  ;;  %v1944_v60 = vadd.f32 %v1787_v16, %v820_v55 }
 0x1a5   : > { %1546 = vlog2.f32 %v1007_v54  ;;  %v1125_v34 = vadd.f32 %v1109_v13, %v1941_v52  ;;  %v1011_v6 = vadd.f32 1.0, %v1010_v56  ;;  %vm1014_vm14 = vcmp.lt.f32.partialorder %v1013_v51, 0.0004427343 }
 0x1a6   : > { %v1006_v63 = vsel %vm1005_vm13, %v1003_v53, %v1000_v48  ;;  %v857_v1 = vand.u32 2147483647, %v1944_v60  ;;  %v840_v53 = vmax.f32 %v1932_v5, 0.0 }
 0x1a7   : > { %v1062_v2 = vadd.f32 %v1006_v63, %v838_v61  ;;  %1166 = vrot.lane.b32.xlu0 %v1077_v28, %s1570_s23  ;;  %1230 = vrot.lane.b32.xlu1 %v1125_v34, %s1571_s25  ;;  %v1012_v24 = vmul.f32 %v1541_v38, %v1011_v6  ;;  %v1096_v61 = vld [vmem:[%s1809_s20 + $0x60] sm:$0xff] }
 0x1a8   : > { %v873_v7 = vsub.f32 0.0, %v857_v1 }
 0x1a9   : > { %v1078_v14 = vadd.f32 0.1, %v1062_v2 }
 0x1aa   : > { %v1545_v4 = vpop.eup %1544  ;;  %v902_v49 = vmul.f32 1.442695, %v873_v7 }
 0x1ab   : > { %v1547_v15 = vpop.eup %1546  ;;  %v823_v18 = vpop.f32.mrf.mxu3  ;;  %v1110_v43 = vmul.f32 %v1094_v12, %v1078_v14  ;;  %v1016_v19 = vadd.f32 1.0, %v1545_v4  ;;  %v1019_v20 = vmul.f32 -0.5, %v1545_v4  ;;  %v1022_v37 = vand.u32 2147483647, %v1545_v4 }
 0x1ac   : > { %v1009_v22 = vmul.f32 0.6931472, %v1547_v15  ;;  %1548 = vpow2.f32 %v902_v49  ;;  %v1956_v25 = vadd.f32 %v1787_v16, %v823_v18  ;;  %v763_v12 = vpop.f32.mrf.mxu2  ;;  %v841_v18 = vmax.f32 %v1944_v60, 0.0 }
 0x1ad   : > { %v1126_v26 = vadd.f32 %v1110_v43, %v1953_v17  ;;  %1550 = vlog2.f32 %v1016_v19  ;;  %v1020_v31 = vadd.f32 1.0, %v1019_v20  ;;  %vm1023_vm15 = vcmp.lt.f32.partialorder %v1022_v37, 0.0004427343 }
 0x1ae   : > { %v1015_v27 = vsel %vm1014_vm14, %v1012_v24, %v1009_v22  ;;  %v858_v29 = vand.u32 2147483647, %v1956_v25 }
 0x1af   : > { %v1063_v30 = vadd.f32 %v1015_v27, %v839_v59  ;;  %1232 = vrot.lane.b32.xlu2 %v1126_v26, %s1571_s25  ;;  %1168 = vrot.lane.b32.xlu1 %v1078_v14, %s1570_s23  ;;  %v1021_v47 = vmul.f32 %v1545_v4, %v1020_v31 }
 0x1b0   : > { %v874_v32 = vsub.f32 0.0, %v858_v29 }
 0x1b1   : > { %v1079_v36 = vadd.f32 0.1, %v1063_v30  ;;  %v842_v30 = vmax.f32 %v1956_v25, 0.0 }
 0x1b2   : > { %v1549_v35 = vpop.eup %1548  ;;  %v904_v8 = vmul.f32 1.442695, %v874_v32 }
 0x1b3   : > { %v1551_v41 = vpop.eup %1550  ;;  %v825_v44 = vpop.f32.mrf.mxu3  ;;  %v1111_v46 = vmul.f32 %v1095_v33, %v1079_v36  ;;  %v1025_v28 = vadd.f32 1.0, %v1549_v35  ;;  %v1028_v50 = vmul.f32 -0.5, %v1549_v35  ;;  %v1031_v63 = vand.u32 2147483647, %v1549_v35 }
 0x1b4   : > { %1552 = vpow2.f32 %v904_v8  ;;  %v1968_v38 = vadd.f32 %v1787_v16, %v825_v44  ;;  %v1018_v21 = vmul.f32 0.6931472, %v1551_v41  ;;  %v766_v60 = vpop.f32.mrf.mxu2 }
 0x1b5   : > { %v1127_v54 = vadd.f32 %v1111_v46, %v1965_v42  ;;  %1554 = vlog2.f32 %v1025_v28  ;;  %v1029_v16 = vadd.f32 1.0, %v1028_v50  ;;  %vm1032_vm1 = vcmp.lt.f32.partialorder %v1031_v63, 0.0004427343 }
 0x1b6   : > { %v859_v55 = vand.u32 2147483647, %v1968_v38  ;;  %v1024_v13 = vsel %vm1023_vm15, %v1021_v47, %v1018_v21  ;;  %v843_v25 = vmax.f32 %v1968_v38, 0.0  ;;  %v1989_v50 = vadd.f32 %v1815_v11, %v763_v12  ;;  %v1099_v38 = vld [vmem:[%s1809_s20 + $0x78] sm:$0xff] }
 0x1b7   : > { %1234 = vrot.lane.b32.xlu0 %v1127_v54, %s1571_s25  ;;  %1170 = vrot.lane.b32.xlu2 %v1079_v36, %s1570_s23  ;;  %v1064_v48 = vadd.f32 %v1024_v13, %v840_v53  ;;  %v1030_v51 = vmul.f32 %v1549_v35, %v1029_v16  ;;  %v1098_v16 = vld [vmem:[%s1809_s20 + $0x70] sm:$0xff] }
 0x1b8   : > { %v875_v56 = vsub.f32 0.0, %v859_v55 }
 0x1b9   : > { %v1080_v34 = vadd.f32 0.1, %v1064_v48 }
 0x1ba   : > { %v1553_v1 = vpop.eup %1552  ;;  %v906_v2 = vmul.f32 1.442695, %v875_v56 }
 0x1bb   : > { %v1555_v5 = vpop.eup %1554  ;;  %v1112_v6 = vmul.f32 %v1096_v61, %v1080_v34  ;;  %v1034_v7 = vadd.f32 1.0, %v1553_v1  ;;  %v1037_v4 = vmul.f32 -0.5, %v1553_v1  ;;  %v1040_v20 = vand.u32 2147483647, %v1553_v1 }
 0x1bc   : > { %1556 = vpow2.f32 %v906_v2  ;;  %v1027_v14 = vmul.f32 0.6931472, %v1555_v5  ;;  %v768_v54 = vpop.f32.mrf.mxu2 }
 0x1bd   : > { %v1128_v49 = vadd.f32 %v1112_v6, %v1977_v3  ;;  %1558 = vlog2.f32 %v1034_v7  ;;  %v1038_v43 = vadd.f32 1.0, %v1037_v4  ;;  %vm1041_vm2 = vcmp.lt.f32.partialorder %v1040_v20, 0.0004427343 }
 0x1be   : > { %v1033_v15 = vsel %vm1032_vm1, %v1030_v51, %v1027_v14  ;;  %v2014_v7 = vadd.f32 %v1815_v11, %v766_v60 }
 0x1bf   : > { %1172 = vrot.lane.b32.xlu0 %v1080_v34, %s1570_s23  ;;  %1236 = vrot.lane.b32.xlu1 %v1128_v49, %s1571_s25  ;;  %v1065_v19 = vadd.f32 %v1033_v15, %v841_v18  ;;  %v1039_v27 = vmul.f32 %v1553_v1, %v1038_v43  ;;  %v2004_v34 = vadd.f32 %v1815_v11, %v768_v54 }
 0x1c1   : > { %v1081_v31 = vadd.f32 0.1, %v1065_v19  ;;  %v1215_v46 = vpop.permute.xlu2 %1214 }
 0x1c2   : > { %v1557_v22 = vpop.eup %1556 }
 0x1c3   : > { %v1559_v24 = vpop.eup %1558  ;;  %v1043_v59 = vadd.f32 1.0, %v1557_v22  ;;  %v1046_v29 = vmul.f32 -0.5, %v1557_v22  ;;  %v1049_v35 = vand.u32 2147483647, %v1557_v22  ;;  %v1113_v28 = vmul.f32 %v1097_v39, %v1081_v31 }
 0x1c4   : > { %v1036_v26 = vmul.f32 0.6931472, %v1559_v24 }
 0x1c5   : > { %1560 = vlog2.f32 %v1043_v59  ;;  %v1047_v36 = vadd.f32 1.0, %v1046_v29  ;;  %vm1050_vm3 = vcmp.lt.f32.partialorder %v1049_v35, 0.0004427343  ;;  %v1129_v56 = vadd.f32 %v1113_v28, %v1989_v50 }
 0x1c6   : > { %v1042_v32 = vsel %vm1041_vm2, %v1039_v27, %v1036_v26 }
 0x1c7   : > { %1174 = vrot.lane.b32.xlu1 %v1081_v31, %s1570_s23  ;;  %v1066_v33 = vadd.f32 %v1042_v32, %v842_v30  ;;  %v1048_v44 = vmul.f32 %v1557_v22, %v1047_v36 }
 0x1c9   : > { %v1082_v37 = vadd.f32 0.1, %v1066_v33 }
 0x1cb   : > { %v1561_v8 = vpop.eup %1560  ;;  %1176 = vrot.lane.b32.xlu2 %v1082_v37, %s1570_s23  ;;  %v1114_v5 = vmul.f32 %v1098_v16, %v1082_v37 }
 0x1cc   : > { %v1045_v41 = vmul.f32 0.6931472, %v1561_v8 }
 0x1cd   : > { %v1149_v47 = vpop.permute.xlu0 %1148  ;;  %v1130_v14 = vadd.f32 %v1114_v5, %v2014_v7 }
 0x1ce   : > { %v1051_v21 = vsel %vm1050_vm3, %v1048_v44, %v1045_v41  ;;  %v1261_v55 = vsel %vm1260_vm4, %v1821_v23, %v1149_v47 }
 0x1cf   : > { %v1067_v53 = vadd.f32 %v1051_v21, %v843_v25 }
 0x1d1   : > { %v1213_v13 = vpop.permute.xlu1 %1212  ;;  %v1083_v48 = vadd.f32 0.1, %v1067_v53 }
 0x1d2   : > { %v1277_v61 = vsel %vm420_vm0, %v1261_v55, %v1213_v13 }
 0x1d3   : > { %1294 = vst.msk [vmem:[%s1995_s29] sm:$0xff] %vm1293_vm5, %v1277_v61  ;;  %1178 = vrot.lane.b32.xlu0 %v1083_v48, %s1570_s23  ;;  %1238 = vrot.lane.b32.xlu2 %v1129_v56, %s1571_s25  ;;  %v1115_v63 = vmul.f32 %v1099_v38, %v1083_v48 }
 0x1d5   : > { %v1151_v23 = vpop.permute.xlu0 %1150  ;;  %v1157_v1 = vpop.permute.xlu2 %1156  ;;  %v1131_v2 = vadd.f32 %v1115_v63, %v2004_v34 }
 0x1d6   : > { %v1262_v6 = vsel %vm1260_vm4, %v1836_v45, %v1151_v23  ;;  %v1265_v51 = vsel %vm1260_vm4, %v1885_v0, %v1157_v1 }
 0x1d7   : > { %v1278_v12 = vsel %vm420_vm0, %v1262_v6, %v1215_v46  ;;  %1242 = vrot.lane.b32.xlu1 %v1131_v2, %s1571_s25 }
 0x1d8   : > { %1295 = vst.msk [vmem:[%s1995_s29 + $0x8] sm:$0xff] %vm1293_vm5, %v1278_v12 }
 0x1db   : > { %1240 = vrot.lane.b32.xlu0 %v1130_v14, %s1571_s25 }
 0x1dd   : > { %v1221_v4 = vpop.permute.xlu2 %1220  ;;  %v1153_v49 = vpop.permute.xlu1 %1152 }
 0x1de   : > { %v1281_v11 = vsel %vm420_vm0, %v1265_v51, %v1221_v4  ;;  %v1263_v45 = vsel %vm1260_vm4, %v1849_v57, %v1153_v49 }
 0x1df   : > { %1298 = vst.msk [vmem:[%s1995_s29 + $0x20] sm:$0xff] %vm1293_vm5, %v1281_v11 }
 0x1e1   : > { %v1217_v15 = vpop.permute.xlu0 %1216 }
 0x1e2   : > { %v1279_v18 = vsel %vm420_vm0, %v1263_v45, %v1217_v15 }
 0x1e3   : > { %1296 = vst.msk [vmem:[%s1995_s29 + $0x10] sm:$0xff] %vm1293_vm5, %v1279_v18 }
 0x1e5   : > { %v1155_v43 = vpop.permute.xlu1 %1154  ;;  %v1159_v22 = vpop.permute.xlu2 %1158 }
 0x1e6   : > { %v1264_v0 = vsel %vm1260_vm4, %v1872_v40, %v1155_v43  ;;  %v1266_v57 = vsel %vm1260_vm4, %v1891_v58, %v1159_v22 }
 0x1ed   : > { %v1219_v19 = vpop.permute.xlu1 %1218 }
 0x1ee   : > { %v1280_v20 = vsel %vm420_vm0, %v1264_v0, %v1219_v19 }
 0x1ef   : > { %1297 = vst.msk [vmem:[%s1995_s29 + $0x18] sm:$0xff] %vm1293_vm5, %v1280_v20 }
 0x1f1   : > { %v1227_v30 = vpop.permute.xlu2 %1226 }
 0x1f9   : > { %v1223_v24 = vpop.permute.xlu0 %1222  ;;  %v1165_v32 = vpop.permute.xlu2 %1164 }
 0x1fa   : > { %v1282_v59 = vsel %vm420_vm0, %v1266_v57, %v1223_v24  ;;  %v1269_v33 = vsel %vm1260_vm4, %v1929_v9, %v1165_v32 }
 0x1fb   : > { %1299 = vst.msk [vmem:[%s1995_s29 + $0x28] sm:$0xff] %vm1293_vm5, %v1282_v59 }
 0x201   : > { %v1161_v26 = vpop.permute.xlu0 %1160  ;;  %v1225_v27 = vpop.permute.xlu1 %1224 }
 0x202   : > { %v1267_v40 = vsel %vm1260_vm4, %v1904_v10, %v1161_v26 }
 0x203   : > { %v1283_v29 = vsel %vm420_vm0, %v1267_v40, %v1225_v27 }
 0x204   : > { %1300 = vst.msk [vmem:[%s1995_s29 + $0x30] sm:$0xff] %vm1293_vm5, %v1283_v29 }
 0x209   : > { %v1163_v31 = vpop.permute.xlu1 %1162  ;;  %v1233_v8 = vpop.permute.xlu2 %1232 }
 0x20a   : > { %v1268_v58 = vsel %vm1260_vm4, %v1917_v62, %v1163_v31 }
 0x20b   : > { %v1284_v60 = vsel %vm420_vm0, %v1268_v58, %v1227_v30 }
 0x20c   : > { %1301 = vst.msk [vmem:[%s1995_s29 + $0x38] sm:$0xff] %vm1293_vm5, %v1284_v60 }
 0x211   : > { %v1229_v10 = vpop.permute.xlu0 %1228  ;;  %v1171_v25 = vpop.permute.xlu2 %1170 }
 0x212   : > { %v1285_v36 = vsel %vm420_vm0, %v1269_v33, %v1229_v10  ;;  %v1272_v46 = vsel %vm1260_vm4, %v1965_v42, %v1171_v25 }
 0x213   : > { %1302 = vst.msk [vmem:[%s1995_s29 + $0x40] sm:$0xff] %vm1293_vm5, %v1285_v36 }
 0x219   : > { %v1167_v37 = vpop.permute.xlu0 %1166  ;;  %v1231_v35 = vpop.permute.xlu1 %1230 }
 0x21a   : > { %v1270_v62 = vsel %vm1260_vm4, %v1941_v52, %v1167_v37 }
 0x21b   : > { %v1286_v39 = vsel %vm420_vm0, %v1270_v62, %v1231_v35 }
 0x21c   : > { %1303 = vst.msk [vmem:[%s1995_s29 + $0x48] sm:$0xff] %vm1293_vm5, %v1286_v39 }
 0x221   : > { %v1169_v41 = vpop.permute.xlu1 %1168 }
 0x222   : > { %v1271_v9 = vsel %vm1260_vm4, %v1953_v17, %v1169_v41 }
 0x223   : > { %v1287_v44 = vsel %vm420_vm0, %v1271_v9, %v1233_v8 }
 0x224   : > { %1304 = vst.msk [vmem:[%s1995_s29 + $0x50] sm:$0xff] %vm1293_vm5, %v1287_v44 }
 0x225   : > { %v1177_v28 = vpop.permute.xlu2 %1176 }
 0x226   : > { %v1275_v16 = vsel %vm1260_vm4, %v2014_v7, %v1177_v28 }
 0x229   : > { %v1235_v52 = vpop.permute.xlu0 %1234 }
 0x22a   : > { %v1288_v47 = vsel %vm420_vm0, %v1272_v46, %v1235_v52 }
 0x22b   : > { %1305 = vst.msk [vmem:[%s1995_s29 + $0x58] sm:$0xff] %vm1293_vm5, %v1288_v47 }
 0x22d   : > { %v1239_v55 = vpop.permute.xlu2 %1238 }
 0x231   : > { %v1173_v21 = vpop.permute.xlu0 %1172  ;;  %v1237_v53 = vpop.permute.xlu1 %1236 }
 0x232   : > { %v1273_v17 = vsel %vm1260_vm4, %v1977_v3, %v1173_v21 }
 0x233   : > { %v1289_v54 = vsel %vm420_vm0, %v1273_v17, %v1237_v53 }
 0x234   : > { %1306 = vst.msk [vmem:[%s1995_s29 + $0x60] sm:$0xff] %vm1293_vm5, %v1289_v54 }
 0x239   : > { %v1175_v38 = vpop.permute.xlu1 %1174 }
 0x23a   : > { %v1274_v42 = vsel %vm1260_vm4, %v1989_v50, %v1175_v38 }
 0x23b   : > { %v1290_v13 = vsel %vm420_vm0, %v1274_v42, %v1239_v55 }
 0x23c   : > { %1307 = vst.msk [vmem:[%s1995_s29 + $0x68] sm:$0xff] %vm1293_vm5, %v1290_v13 }
 0x245   : > { %v1179_v48 = vpop.permute.xlu0 %1178 }
 0x246   : > { %v1276_v56 = vsel %vm1260_vm4, %v2004_v34, %v1179_v48 }
 0x249   : > { %v1243_v61 = vpop.permute.xlu1 %1242 }
 0x24a   : > { %v1292_v3 = vsel %vm420_vm0, %v1276_v56, %v1243_v61 }
 0x24b   : > { %1309 = vst.msk [vmem:[%s1995_s29 + $0x78] sm:$0xff] %vm1293_vm5, %v1292_v3 }
 0x24d   : > { %v1241_v63 = vpop.permute.xlu0 %1240 }
 0x24e   : > { %v1291_v23 = vsel %vm420_vm0, %v1275_v16, %v1241_v63 }
 0x24f   : > { %1308 = vst.msk [vmem:[%s1995_s29 + $0x70] sm:$0xff] %vm1293_vm5, %v1291_v23 }
 0x250 PF: > { %s18_s27 = sadd.s32 1, %s1568_s27  }
 0x251   : > { %p15_p4 = scmp.ge.s32.totalorder %s18_s27, 4  }
 0x253   :  { %17 = sbr.rel (!%p15_p4) target bundleno = 1 (0x1), region = 88 }

</bundles_post_ra>
